<compile_context>
chip_gen: v5e
topology: v5e:2x2
jax: 0.10.0
libtpu: 0.0.40
codegen_flags: <defaults>
</compile_context>

<pallas_src>
import functools

import jax
import jax.numpy as jnp
from jax.experimental import pallas as pl
from jax.experimental.pallas import tpu as pltpu


def get_mask(in_features, out_features, in_flow_features, mask_type=None):
    """JAX port of the PyTorch get_mask; returns (out_features, in_features) float mask."""
    # NOTE: in_flow_features == 1 hits a modulo-by-zero (pre-existing in the PyTorch port).
    if mask_type == 'input':
        in_degrees = jnp.arange(in_features) % in_flow_features
    else:
        in_degrees = jnp.arange(in_features) % (in_flow_features - 1)
    if mask_type == 'output':
        out_degrees = jnp.arange(out_features) % in_flow_features - 1
    else:
        out_degrees = jnp.arange(out_features) % (in_flow_features - 1)
    return (out_degrees[:, None] >= in_degrees[None, :]).astype(jnp.float32)


def _round_up(x, m):
    return ((x + m - 1) // m) * m


def _made_split_kernel(x_ref, w1_ref, w2_ref, w3_ref, bias_ref, out_ref, xpad_ref,
                       *, D, Dp, Hp, pre_exp_tanh):
    # Zero-extend x (TB, D) -> (TB, Dp) in VMEM.  Padded lanes are exactly 0, so the
    # padded columns of m/a/u and the logdet sum are unaffected.  Rewritten fully each
    # step so it is correct regardless of how the grid is split across TensorCores.
    xpad_ref[...] = jnp.zeros_like(xpad_ref)
    xpad_ref[:, :D] = x_ref[...].astype(jnp.float32)
    x = xpad_ref[...]                                        # (TB, Dp) f32

    b1 = bias_ref[0:1, :2 * Hp]                              # (1, 2Hp) f32
    b2 = bias_ref[1:2, :2 * Hp]
    b3 = bias_ref[2:3, :2 * Dp]

    # Fused layer 1: [h | g] in one 2*Hp-wide matmul (bf16 operands, f32 accumulate).
    hg = jnp.dot(x.astype(jnp.bfloat16), w1_ref[...],
                 preferred_element_type=jnp.float32) + b1
    hg = jnp.concatenate(
        [jnp.tanh(hg[:, :Hp]), jnp.maximum(hg[:, Hp:], 0.0)], axis=1)

    # Fused hidden layer: block-diagonal weight, one (2Hp x 2Hp) matmul.
    hg = jnp.dot(hg.astype(jnp.bfloat16), w2_ref[...],
                 preferred_element_type=jnp.float32) + b2
    hg = jnp.concatenate(
        [jnp.tanh(hg[:, :Hp]), jnp.maximum(hg[:, Hp:], 0.0)], axis=1)

    # Fused output layer: [m | a].
    ma = jnp.dot(hg.astype(jnp.bfloat16), w3_ref[...],
                 preferred_element_type=jnp.float32) + b3
    m = ma[:, :Dp]
    a = ma[:, Dp:]
    if pre_exp_tanh:
        a = jnp.tanh(a)

    u = (x - m) * jnp.exp(-a)                                # padded cols exactly 0
    logdet = -jnp.sum(a, axis=-1, keepdims=True)             # (TB, 1)

    # Single lane-dense store: u in lanes [0, D), logdet stashed in padding lane D.
    lane = jax.lax.broadcasted_iota(jnp.int32, u.shape, 1)
    out_ref[...] = jnp.where(lane == D, logdet, u).astype(out_ref.dtype)


def prepare_made_split_weights(w_sj, b_sj, w_sh, b_sh, w_so, b_so,
                               w_tj, b_tj, w_th, b_th, w_to, b_to):
    """One-time weight prep: mask, transpose, fuse s/t paths, pad, cast to bf16.

    Weights are in PyTorch nn.Linear layout (out_features, in_features).
    Call once; reuse the returned params across forward calls.
    """
    H, D = w_sj.shape
    input_mask = get_mask(D, H, D, mask_type='input')        # (H, D)
    hidden_mask = get_mask(H, H, D)                          # (H, H)
    output_mask = get_mask(H, D, D, mask_type='output')      # (D, H)

    # Dp reserves at least one padding lane (index D) to carry logdet in the output.
    Dp = _round_up(D + 1, 128)
    Hp = _round_up(H, 128)

    def mt(w, mask, rows_p, cols_p):
        wt = (w * mask).T.astype(jnp.float32)                # (in, out), pre-masked
        wt = jnp.pad(wt, ((0, rows_p - wt.shape[0]), (0, cols_p - wt.shape[1])))
        return wt.astype(jnp.bfloat16)

    # Layer 1: concat along N -> (Dp, 2*Hp)
    w1 = jnp.concatenate([mt(w_sj, input_mask, Dp, Hp),
                          mt(w_tj, input_mask, Dp, Hp)], axis=1)
    # Layer 2: block-diagonal -> (2*Hp, 2*Hp)
    z_hh = jnp.zeros((Hp, Hp), jnp.bfloat16)
    w2 = jnp.concatenate([
        jnp.concatenate([mt(w_sh, hidden_mask, Hp, Hp), z_hh], axis=1),
        jnp.concatenate([z_hh, mt(w_th, hidden_mask, Hp, Hp)], axis=1)], axis=0)
    # Layer 3: block-diagonal -> (2*Hp, 2*Dp)
    z_hd = jnp.zeros((Hp, Dp), jnp.bfloat16)
    w3 = jnp.concatenate([
        jnp.concatenate([mt(w_so, output_mask, Hp, Dp), z_hd], axis=1),
        jnp.concatenate([z_hd, mt(w_to, output_mask, Hp, Dp)], axis=1)], axis=0)

    # Pack the six biases into a single (3, Wb) f32 array.
    Wb = max(2 * Hp, 2 * Dp)

    def pack_row(ba, pa, bb, pb):
        v = jnp.concatenate([jnp.pad(ba.astype(jnp.float32), (0, pa)),
                             jnp.pad(bb.astype(jnp.float32), (0, pb))])
        return jnp.pad(v, (0, Wb - v.shape[0]))

    bias = jnp.stack([
        pack_row(b_sj, Hp - H, b_tj, Hp - H),
        pack_row(b_sh, Hp - H, b_th, Hp - H),
        pack_row(b_so, Dp - D, b_to, Dp - D),
    ], axis=0)                                               # (3, Wb)

    return dict(w1=w1, w2=w2, w3=w3, bias=bias, D=D, H=H, Dp=Dp, Hp=Hp)


def made_split_direct(inputs, params, *, pre_exp_tanh=False):
    """MADESplit forward, mode='direct'.  Returns (u, logdet) with shapes (B, D), (B, 1)."""
    w1, w2, w3, bias = params['w1'], params['w2'], params['w3'], params['bias']
    D, Dp, Hp = params['D'], params['Dp'], params['Hp']
    Wb = bias.shape[1]
    B = inputs.shape[0]
    assert inputs.shape[1] == D

    # ---- VMEM budget & batch tile ------------------------------------------------
    try:
        vmem_cap = int(pltpu.get_tpu_info().vmem_capacity_bytes)
    except Exception:
        vmem_cap = 64 * 1024 * 1024                   # conservative v7x per-core figure
    weight_bytes = 2 * (Dp * 2 * Hp + 4 * Hp * Hp + 4 * Hp * Dp) + 4 * 3 * Wb
    # per-row VMEM: double-buffered x/out tiles, x-pad scratch, f32+bf16 activation temps
    per_row_bytes = 4 * (2 * D + 8 * Dp + 8 * Hp)
    budget = max(int(0.65 * vmem_cap) - 2 * weight_bytes, 4 * 1024 * 1024)
    tb = max(8, min(2048, (budget // per_row_bytes) // 8 * 8))
    # keep >= ~8 batch tiles when B allows (megacore sharding + DMA/compute overlap)
    tb = min(tb, max(8, _round_up(pl.cdiv(B, 8), 8)))
    TB = tb
    B_pad = _round_up(B, TB)

    x = inputs.astype(jnp.float32)
    if B_pad != B:
        x = jnp.pad(x, ((0, B_pad - B), (0, 0)))      # batch pad only; no lane pad of x

    grid = (B_pad // TB,)
    vmem_limit = int(min(0.9 * vmem_cap,
                         max(48 << 20, 2 * weight_bytes + TB * per_row_bytes + (8 << 20))))

    flops = 2 * B_pad * (Dp * 2 * Hp + 4 * Hp * Hp + 4 * Hp * Dp)
    transcendentals = B_pad * (2 * Hp + Dp + (Dp if pre_exp_tanh else 0))
    bytes_accessed = 4 * B_pad * (D + Dp) + weight_bytes

    kernel = functools.partial(_made_split_kernel, D=D, Dp=Dp, Hp=Hp,
                               pre_exp_tanh=pre_exp_tanh)

    out = pl.pallas_call(
        kernel,
        grid=grid,
        out_shape=jax.ShapeDtypeStruct((B_pad, Dp), jnp.float32),
        in_specs=[
            pl.BlockSpec((TB, D), lambda i: (i, 0)),            # x: batch-tiled, true width D
            pl.BlockSpec((Dp, 2 * Hp), lambda i: (0, 0)),        # fused joiner weight (resident)
            pl.BlockSpec((2 * Hp, 2 * Hp), lambda i: (0, 0)),    # fused block-diag hidden weight
            pl.BlockSpec((2 * Hp, 2 * Dp), lambda i: (0, 0)),    # fused block-diag output weight
            pl.BlockSpec((3, Wb), lambda i: (0, 0)),             # packed biases
        ],
        out_specs=pl.BlockSpec((TB, Dp), lambda i: (i, 0)),      # single lane-dense output
        scratch_shapes=[pltpu.VMEM((TB, Dp), jnp.float32)],      # zero-extended x
        compiler_params=pltpu.CompilerParams(
            dimension_semantics=("parallel",),
            vmem_limit_bytes=vmem_limit,
        ),
        cost_estimate=pl.CostEstimate(
            flops=int(flops),
            transcendentals=int(transcendentals),
            bytes_accessed=int(bytes_accessed),
        ),
    )(x, w1, w2, w3, bias)

    u = out[:B, :D].astype(inputs.dtype)
    logdet = out[:B, D:D + 1].astype(inputs.dtype)
    return u, logdet


def _reference(x, w_sj, b_sj, w_sh, b_sh, w_so, b_so,
               w_tj, b_tj, w_th, b_th, w_to, b_to,
               pre_exp_tanh=False, matmul_dtype=jnp.float32):
    """Pure-JAX reference.  matmul_dtype=bf16 mirrors the kernel's MXU precision."""
    D = x.shape[1]
    H = w_sj.shape[0]
    m_in = get_mask(D, H, D, 'input')
    m_hid = get_mask(H, H, D)
    m_out = get_mask(H, D, D, 'output')

    def lin(inp, w, b, mask):
        return jnp.dot(inp.astype(matmul_dtype), (w * mask).T.astype(matmul_dtype),
                       preferred_element_type=jnp.float32) + b

    h = jnp.tanh(lin(x, w_sj, b_sj, m_in))
    h = jnp.tanh(lin(h, w_sh, b_sh, m_hid))
    m = lin(h, w_so, b_so, m_out)
    g = jax.nn.relu(lin(x, w_tj, b_tj, m_in))
    g = jax.nn.relu(lin(g, w_th, b_th, m_hid))
    a = lin(g, w_to, b_to, m_out)
    if pre_exp_tanh:
        a = jnp.tanh(a)
    u = (x - m) * jnp.exp(-a)
    return u, -jnp.sum(a, axis=-1, keepdims=True)


if __name__ == "__main__":
    key = jax.random.PRNGKey(0)
    keys = jax.random.split(key, 13)

    B, D, H = 16, 8, 32   # batch=16, num_inputs=8, num_hidden=32

    x = jax.random.normal(keys[0], (B, D), dtype=jnp.float32)

    def mk_w(k, o, i):
        return 0.2 * jax.random.normal(k, (o, i), dtype=jnp.float32)

    def mk_b(k, o):
        return 0.1 * jax.random.normal(k, (o,), dtype=jnp.float32)

    w_sj, b_sj = mk_w(keys[1], H, D), mk_b(keys[2], H)
    w_sh, b_sh = mk_w(keys[3], H, H), mk_b(keys[4], H)
    w_so, b_so = mk_w(keys[5], D, H), mk_b(keys[6], D)
    w_tj, b_tj = mk_w(keys[7], H, D), mk_b(keys[8], H)
    w_th, b_th = mk_w(keys[9], H, H), mk_b(keys[10], H)
    w_to, b_to = mk_w(keys[11], D, H), mk_b(keys[12], D)

    # Weight prep is hoisted: done once, reused for every forward call.
    params = prepare_made_split_weights(w_sj, b_sj, w_sh, b_sh, w_so, b_so,
                                        w_tj, b_tj, w_th, b_th, w_to, b_to)

    u, logdet = made_split_direct(x, params)
    jax.block_until_ready((u, logdet))

    assert u.shape == (B, D), u.shape
    assert logdet.shape == (B, 1), logdet.shape

    # Tight check vs a precision-matched reference (bf16 matmul operands, f32 accum).
    u_bf, ld_bf = _reference(x, w_sj, b_sj, w_sh, b_sh, w_so, b_so,
                             w_tj, b_tj, w_th, b_th, w_to, b_to,
                             matmul_dtype=jnp.bfloat16)
    assert jnp.allclose(u, u_bf, atol=2e-3, rtol=2e-3), "u mismatch (bf16-matched ref)"
    assert jnp.allclose(logdet, ld_bf, atol=2e-3, rtol=2e-3), "logdet mismatch (bf16-matched ref)"

    # Sanity check vs the full-f32 reference (bf16 matmul precision trade-off).
    u_f32, ld_f32 = _reference(x, w_sj, b_sj, w_sh, b_sh, w_so, b_so,
                               w_tj, b_tj, w_th, b_th, w_to, b_to,
                               matmul_dtype=jnp.float32)
    assert jnp.allclose(u, u_f32, atol=5e-2, rtol=5e-2), "u far from f32 reference"
    assert jnp.allclose(logdet, ld_f32, atol=5e-2, rtol=5e-2), "logdet far from f32 reference"

    print("KERNEL_OK")
</pallas_src>

<mosaic_0001>
module attributes {stable_mosaic.version = 11 : i64} {
  func.func @_made_split_kernel(%arg0: i32, %arg1: memref<8x8xf32, #tpu.memory_space<vmem>>, %arg2: memref<128x256xbf16, #tpu.memory_space<vmem>>, %arg3: memref<256x256xbf16, #tpu.memory_space<vmem>>, %arg4: memref<256x256xbf16, #tpu.memory_space<vmem>>, %arg5: memref<3x256xf32, #tpu.memory_space<vmem>>, %arg6: memref<8x128xf32, #tpu.memory_space<vmem>>, %arg7: memref<8x128xf32, #tpu.memory_space<vmem>>) attributes {dimension_semantics = [#tpu.dimension_semantics<parallel>], iteration_bounds = array<i64: 2>, scalar_prefetch = 0 : i64, scratch_operands = 1 : i64, tpu.core_type = #tpu.core_type<tc>, window_params = [{transform_indices = @transform_0, window_bounds = array<i64: 8, 8>}, {pipeline_mode = #tpu.pipeline_mode<synchronous>, transform_indices = @transform_1, window_bounds = array<i64: 128, 256>}, {pipeline_mode = #tpu.pipeline_mode<synchronous>, transform_indices = @transform_2, window_bounds = array<i64: 256, 256>}, {pipeline_mode = #tpu.pipeline_mode<synchronous>, transform_indices = @transform_3, window_bounds = array<i64: 256, 256>}, {pipeline_mode = #tpu.pipeline_mode<synchronous>, transform_indices = @transform_4, window_bounds = array<i64: 3, 256>}, {transform_indices = @transform_5, window_bounds = array<i64: 8, 128>}]} {
    %cst = arith.constant 0.000000e+00 : f32
    %0 = vector.broadcast %cst : f32 to vector<8x128xf32>
    %c0 = arith.constant 0 : index
    %c0_0 = arith.constant 0 : index
    %1 = vector.load %arg7[%c0, %c0_0] : memref<8x128xf32, #tpu.memory_space<vmem>>, vector<8x128xf32>
    tpu.vector_store %arg7[%c0, %c0_0], %0 {strides = array<i32>} : memref<8x128xf32, #tpu.memory_space<vmem>>, vector<8x128xf32>,
    %c0_1 = arith.constant 0 : index
    %c0_2 = arith.constant 0 : index
    %2 = vector.load %arg1[%c0_1, %c0_2] : memref<8x8xf32, #tpu.memory_space<vmem>>, vector<8x8xf32>
    %c0_3 = arith.constant 0 : index
    %c0_4 = arith.constant 0 : index
    %3 = vector.load %arg7[%c0_3, %c0_4] : memref<8x128xf32, #tpu.memory_space<vmem>>, vector<8x8xf32>
    tpu.vector_store %arg7[%c0_3, %c0_4], %2 {strides = array<i32>} : memref<8x128xf32, #tpu.memory_space<vmem>>, vector<8x8xf32>,
    %c0_5 = arith.constant 0 : index
    %c0_6 = arith.constant 0 : index
    %4 = vector.load %arg7[%c0_5, %c0_6] : memref<8x128xf32, #tpu.memory_space<vmem>>, vector<8x128xf32>
    %c0_7 = arith.constant 0 : index
    %c0_8 = arith.constant 0 : index
    %5 = vector.load %arg5[%c0_7, %c0_8] : memref<3x256xf32, #tpu.memory_space<vmem>>, vector<1x256xf32>
    %c1 = arith.constant 1 : index
    %c0_9 = arith.constant 0 : index
    %6 = vector.load %arg5[%c1, %c0_9] : memref<3x256xf32, #tpu.memory_space<vmem>>, vector<1x256xf32>
    %c2 = arith.constant 2 : index
    %c0_10 = arith.constant 0 : index
    %7 = vector.load %arg5[%c2, %c0_10] : memref<3x256xf32, #tpu.memory_space<vmem>>, vector<1x256xf32>
    %8 = arith.truncf %4 : vector<8x128xf32> to vector<8x128xbf16>
    %c0_11 = arith.constant 0 : index
    %c0_12 = arith.constant 0 : index
    %9 = vector.load %arg2[%c0_11, %c0_12] : memref<128x256xbf16, #tpu.memory_space<vmem>>, vector<128x256xbf16>
    %cst_13 = arith.constant dense<0.000000e+00> : vector<8x256xf32>
    %10 = tpu.matmul %8, %9, %cst_13 {dimension_numbers = #tpu.dot_dimension_numbers<[1], [0], [0], [1], [0, 0, 1, 1], [], []>} : vector<8x128xbf16>, vector<128x256xbf16>, vector<8x256xf32> -> vector<8x256xf32>
    %11 = vector.broadcast %5 : vector<1x256xf32> to vector<8x256xf32>
    %12 = arith.addf %10, %11 : vector<8x256xf32>
    %13 = vector.extract_strided_slice %12 {offsets = [0, 0], sizes = [8, 128], strides = [1, 1]} : vector<8x256xf32> to vector<8x128xf32>
    %14 = math.tanh %13 : vector<8x128xf32>
    %15 = vector.extract_strided_slice %12 {offsets = [0, 128], sizes = [8, 128], strides = [1, 1]} : vector<8x256xf32> to vector<8x128xf32>
    %cst_14 = arith.constant 0.000000e+00 : f32
    %16 = vector.broadcast %cst_14 : f32 to vector<8x128xf32>
    %17 = arith.maximumf %15, %16 : vector<8x128xf32>
    %18 = tpu.concatenate %14, %17 in 1 : vector<8x128xf32>, vector<8x128xf32> -> vector<8x256xf32>
    %19 = arith.truncf %18 : vector<8x256xf32> to vector<8x256xbf16>
    %c0_15 = arith.constant 0 : index
    %c0_16 = arith.constant 0 : index
    %20 = vector.load %arg3[%c0_15, %c0_16] : memref<256x256xbf16, #tpu.memory_space<vmem>>, vector<256x256xbf16>
    %cst_17 = arith.constant dense<0.000000e+00> : vector<8x256xf32>
    %21 = tpu.matmul %19, %20, %cst_17 {dimension_numbers = #tpu.dot_dimension_numbers<[1], [0], [0], [1], [0, 0, 1, 1], [], []>} : vector<8x256xbf16>, vector<256x256xbf16>, vector<8x256xf32> -> vector<8x256xf32>
    %22 = vector.broadcast %6 : vector<1x256xf32> to vector<8x256xf32>
    %23 = arith.addf %21, %22 : vector<8x256xf32>
    %24 = vector.extract_strided_slice %23 {offsets = [0, 0], sizes = [8, 128], strides = [1, 1]} : vector<8x256xf32> to vector<8x128xf32>
    %25 = math.tanh %24 : vector<8x128xf32>
    %26 = vector.extract_strided_slice %23 {offsets = [0, 128], sizes = [8, 128], strides = [1, 1]} : vector<8x256xf32> to vector<8x128xf32>
    %cst_18 = arith.constant 0.000000e+00 : f32
    %27 = vector.broadcast %cst_18 : f32 to vector<8x128xf32>
    %28 = arith.maximumf %26, %27 : vector<8x128xf32>
    %29 = tpu.concatenate %25, %28 in 1 : vector<8x128xf32>, vector<8x128xf32> -> vector<8x256xf32>
    %30 = arith.truncf %29 : vector<8x256xf32> to vector<8x256xbf16>
    %c0_19 = arith.constant 0 : index
    %c0_20 = arith.constant 0 : index
    %31 = vector.load %arg4[%c0_19, %c0_20] : memref<256x256xbf16, #tpu.memory_space<vmem>>, vector<256x256xbf16>
    %cst_21 = arith.constant dense<0.000000e+00> : vector<8x256xf32>
    %32 = tpu.matmul %30, %31, %cst_21 {dimension_numbers = #tpu.dot_dimension_numbers<[1], [0], [0], [1], [0, 0, 1, 1], [], []>} : vector<8x256xbf16>, vector<256x256xbf16>, vector<8x256xf32> -> vector<8x256xf32>
    %33 = vector.broadcast %7 : vector<1x256xf32> to vector<8x256xf32>
    %34 = arith.addf %32, %33 : vector<8x256xf32>
    %35 = vector.extract_strided_slice %34 {offsets = [0, 0], sizes = [8, 128], strides = [1, 1]} : vector<8x256xf32> to vector<8x128xf32>
    %36 = vector.extract_strided_slice %34 {offsets = [0, 128], sizes = [8, 128], strides = [1, 1]} : vector<8x256xf32> to vector<8x128xf32>
    %37 = arith.subf %4, %35 : vector<8x128xf32>
    %cst_22 = arith.constant 0.000000e+00 : f32
    %38 = vector.broadcast %cst_22 : f32 to vector<8x128xf32>
    %39 = arith.subf %38, %36 : vector<8x128xf32>
    %40 = math.exp %39 : vector<8x128xf32>
    %41 = arith.mulf %37, %40 : vector<8x128xf32>
    %cst_23 = arith.constant dense<0.000000e+00> : vector<8xf32>
    %42 = vector.multi_reduction <add>, %36, %cst_23 [1] : vector<8x128xf32> to vector<8xf32>
    %43 = vector.shape_cast %42 : vector<8xf32> to vector<8x1xf32>
    %cst_24 = arith.constant 0.000000e+00 : f32
    %44 = vector.broadcast %cst_24 : f32 to vector<8x1xf32>
    %45 = arith.subf %44, %43 : vector<8x1xf32>
    %46 = tpu.iota {dimensions = array<i32: 1>} : vector<8x128xi32>
    %c8_i32 = arith.constant 8 : i32
    %47 = vector.broadcast %c8_i32 : i32 to vector<8x128xi32>
    %48 = arith.cmpi eq, %46, %47 : vector<8x128xi32>
    %49 = vector.shape_cast %45 : vector<8x1xf32> to vector<8x1xf32>
    %50 = vector.broadcast %49 : vector<8x1xf32> to vector<8x128xf32>
    %51 = arith.select %48, %50, %41 : vector<8x128xi1>, vector<8x128xf32>
    %c0_25 = arith.constant 0 : index
    %c0_26 = arith.constant 0 : index
    %52 = vector.load %arg6[%c0_25, %c0_26] : memref<8x128xf32, #tpu.memory_space<vmem>>, vector<8x128xf32>
    tpu.vector_store %arg6[%c0_25, %c0_26], %51 {strides = array<i32>} : memref<8x128xf32, #tpu.memory_space<vmem>>, vector<8x128xf32>,
    return
  }
  func.func @transform_0(%arg0: i32) -> (i32, i32) {
    %c0_i32 = arith.constant 0 : i32
    %c0_i32_0 = arith.constant 0 : i32
    return %arg0, %c0_i32 : i32, i32
  }
  func.func @transform_1(%arg0: i32) -> (i32, i32) {
    %c0_i32 = arith.constant 0 : i32
    %c0_i32_0 = arith.constant 0 : i32
    %c0_i32_1 = arith.constant 0 : i32
    return %c0_i32, %c0_i32_0 : i32, i32
  }
  func.func @transform_2(%arg0: i32) -> (i32, i32) {
    %c0_i32 = arith.constant 0 : i32
    %c0_i32_0 = arith.constant 0 : i32
    %c0_i32_1 = arith.constant 0 : i32
    return %c0_i32, %c0_i32_0 : i32, i32
  }
  func.func @transform_3(%arg0: i32) -> (i32, i32) {
    %c0_i32 = arith.constant 0 : i32
    %c0_i32_0 = arith.constant 0 : i32
    %c0_i32_1 = arith.constant 0 : i32
    return %c0_i32, %c0_i32_0 : i32, i32
  }
  func.func @transform_4(%arg0: i32) -> (i32, i32) {
    %c0_i32 = arith.constant 0 : i32
    %c0_i32_0 = arith.constant 0 : i32
    %c0_i32_1 = arith.constant 0 : i32
    return %c0_i32, %c0_i32_0 : i32, i32
  }
  func.func @transform_5(%arg0: i32) -> (i32, i32) {
    %c0_i32 = arith.constant 0 : i32
    %c0_i32_0 = arith.constant 0 : i32
    return %arg0, %c0_i32 : i32, i32
  }
}

</mosaic_0001>

<bundles_post_ra>
// kernel: tpu_custom_call.1
= control target key start
LH: loop header
LB: loop body
LE: loop exit
PB: predicated region body
PF: predicated region fallthrough
CT: control target
= control target key end

     0   :  { %10 = vsyncpa [#allocation4], 0  ;;  %s1865_s0 = inlined_call_operand.vmem [shape: f32[16,8], index: 0, kind: input, shape index: {}]   ;;  %s1866_s1 = inlined_call_operand.hbm [shape: bf16[128,256], index: 1, kind: input, shape index: {}]   ;;  %s1867_s2 = inlined_call_operand.hbm [shape: bf16[256,256], index: 2, kind: input, shape index: {}]   ;;  %s1868_s3 = inlined_call_operand.hbm [shape: bf16[256,256], index: 3, kind: input, shape index: {}]   ;;  %s1869_s4 = inlined_call_operand.vmem [shape: f32[3,256], index: 4, kind: input, shape index: {}]   ;;  %s1870_s5 = inlined_call_operand.hbm [shape: f32[16,128], index: 5, kind: output, shape index: {}]  }
   0x1   :  { %11 = vsyncpa [#allocation7], 0 }
   0x2   :  { %12 = vsyncpa [#allocation5], 0 }
   0x3   :  { %14 = vsyncpa [#allocation5 + $0x1], 0  ;;  %s1728_s18 = smov 0   ;;  %s1730_s19 = smov 0  }
   0x4   :  { %s1732_s20 = smov 0   ;;  %s1734_s21 = smov 0  }
   0x5 LB: > { %s1749_s22 = sadd.s32 4294967295, %s1690_s21   ;;  %s1033_s23 = sadd.s32 4294967294, %s1690_s21   ;;  %s1690_s21 = sphi %s1734_s21, %s1878_s21   ;;  %s1686_s20 = sphi %s1732_s20, %s1877_s20   ;;  %s1682_s19 = sphi %s1730_s19, %s1876_s19   ;;  %s1678_s18 = sphi %s1728_s18, %s1875_s18  }
   0x6   : > { %s1753_s24 = sadd.s32 1, %s1690_s21   ;;  %s137_s25 = sadd.s32 1, %s1686_s20 }
   0x7   : > { %s134_s26 = ssub.s32 %s1690_s21, %s1753_s24  ;;  %p147_p0 = scmp.ne.s32.totalorder %s1686_s20, %s1682_s19 }
   0x8   : > { %p135_p1 = scmp.eq.s32.totalorder %s134_s26, 0  ;;  %p148_p2 = scmp.eq.s32.totalorder %s1749_s22, 1 }
   0x9   : > { %p153_p3 = scmp.ne.s32.totalorder %s1682_s19, %s1678_s18  ;;  %p154_p4 = scmp.eq.s32.totalorder %s1033_s23, 1 }
   0xa   : > { %s1764_s27 = scalar_select %p135_p1, %s1686_s20, %s137_s25  }
   0xb   : > { %p1766_p5 = por %p148_p2, %p147_p0  ;;  %p1770_p6 = por %p154_p4, %p153_p3 }
   0xc   : > { %p1034_p7 = scmp.ge.s32.totalorder %s1690_s21, 1  ;;  %p161_p8 = scmp.lt.s32.totalorder %s1690_s21, 3 }
   0xd   : > { %p1479_p9 = scmp.eq.s32.totalorder %s1749_s22, 0  ;;  %s186_s8 = sshll.u32 %s1867_s2, 4  ;;  %s187_s8 = int_to_ptr.hbm [resolvable:$true] %s186_s8 }
   0xe   : > { %p1777_p10 = pnand %p1034_p7, %p161_p8  ;;  %s172_s11 = sshll.u32 %s1866_s1, 4  ;;  %s173_s11 = int_to_ptr.hbm [resolvable:$true] %s172_s11 }
   0xf   : > { %s1692_s13 = smov [#allocation6]   ;;  %s1693_s15 = smov 128  }
  0x10   : > { %p1465_p11 = pneg %p1777_p10  ;;  %s188_s14 = sshll.u32 %s1692_s13, 4  ;;  %s189_s14 = int_to_ptr.vmem [resolvable:$true] %s188_s14 }
  0x11   : > { %s1694_s16 = smov 8   ;;  %s1695_s17 = smov [#allocation3]  }
  0x12   : > { %p1791_p12 = pnand %p1479_p9, %p1465_p11  ;;  %s174_s23 = sshll.u32 %s1695_s17, 4  ;;  %s175_s23 = int_to_ptr.vmem [resolvable:$true] %s174_s23 }
  0x13   : > { %s200_s6 = sshll.u32 %s1868_s3, 4  ;;  %s1696_s7 = smov [#allocation8]   ;;  %s201_s6 = int_to_ptr.hbm [resolvable:$true] %s200_s6 }
  0x14   : > { %1471 = dma.hbm_to_vmem [thread:$0]  (!%p1791_p12), %s187_s8, 4096, %s189_s14, [#allocation7], %s1693_s15, %s1693_s15, %s1694_s16  }
  0x15   : > { %1468 = dma.hbm_to_vmem [thread:$0]  (!%p1791_p12), %s173_s11, 2048, %s175_s23, [#allocation4], %s1693_s15, %s1693_s15, %s1694_s16  }
  0x16   : > { %s202_s9 = sshll.u32 %s1696_s7, 4  ;;  %228 = sbr.rel (%p1777_p10) target bundleno = 599 (0x257), region = 40  ;;  %s203_s9 = int_to_ptr.vmem [resolvable:$true] %s202_s9 }
  0x17   : > { %1474 = dma.hbm_to_vmem [thread:$0]  (!%p1791_p12), %s201_s6, 4096, %s203_s9, [#allocation7], %s1693_s15, %s1693_s15, %s1694_s16  }
  0x1b   : > { %1665 = dma.done.wait (%p1479_p9), [#allocation4], 2048  }
  0x1c   : > { %1667 = vsyncadd (%p1479_p9), [#allocation4], 4294965248 }
  0x1d   : > { %1669 = dma.done.wait (%p1479_p9), [#allocation7], 8192  }
  0x1e   : > { %1671 = vsyncadd (%p1479_p9), [#allocation7], 4294959104  ;;  %v1697_v0 = vmov 0.0   ;;  %p266_p13 = scmp.lt.s32.totalorder %s1749_s22, 1  ;;  %v1105_v1 = vld [vmem:[#allocation3 + $0x70] sm:$0xf] }
  0x1f   : > { %270 = vst [vmem:[#allocation2] sm:$0xff] %v1697_v0  ;;  %v1386_v2 = vld [vmem:[#allocation3 + $0x74] sm:$0xf0]  ;;  %v1385_v3 = vld [vmem:[#allocation3 + $0x74] sm:$0xf]  ;;  %vm272_vm0 = vcmask 64512  }
  0x20   : > { %s267_s8 = scalar_select %p266_p13, %s1749_s22, 1  ;;  %v1106_v4 = vor.u32 %v1386_v2, %v1105_v1  ;;  %v1107_v5 = vld [vmem:[#allocation3 + $0x78] sm:$0xf0]  ;;  %v1097_v6 = vld [vmem:[#allocation3 + $0x60] sm:$0xf] }
  0x21   : > { %v1384_v7 = vld [vmem:[#allocation3 + $0x64] sm:$0xf0]  ;;  %v1110_v8 = vor.u32 %v1385_v3, %v1107_v5  ;;  %v1383_v9 = vld [vmem:[#allocation3 + $0x64] sm:$0xf]  ;;  %v1099_v10 = vld [vmem:[#allocation3 + $0x68] sm:$0xf0] }
  0x22   : > { %382 = vmatpush.bf16.msra.mxu0 %v1106_v4  ;;  %v1098_v11 = vor.u32 %v1384_v7, %v1097_v6  ;;  %v1102_v12 = vor.u32 %v1383_v9, %v1099_v10  ;;  %v1089_v13 = vld [vmem:[#allocation3 + $0x50] sm:$0xf]  ;;  %v1382_v14 = vld [vmem:[#allocation3 + $0x54] sm:$0xf0]  ;;  %s1044_s30 = sshll.u32 %s267_s8, 3  ;;  %s263_s25 = sand.u32 1, %s1682_s19  }
  0x23   : > { %395 = vmatpush.bf16.msra.mxu1 %v1110_v8  ;;  %v1381_v15 = vld [vmem:[#allocation3 + $0x54] sm:$0xf]  ;;  %v1091_v16 = vld [vmem:[#allocation3 + $0x58] sm:$0xf0]  ;;  %v1090_v17 = vor.u32 %v1382_v14, %v1089_v13  ;;  %s269_s12 = scalar_lea.vmem %s1865_s0, %s1044_s30  ;;  %v1081_v19 = vld [vmem:[#allocation3 + $0x40] sm:$0xf] }
  0x24   : > { %v1094_v18 = vor.u32 %v1381_v15, %v1091_v16  ;;  %v1380_v20 = vld [vmem:[#allocation3 + $0x44] sm:$0xf0]  ;;  %v1379_v21 = vld [vmem:[#allocation3 + $0x44] sm:$0xf]  ;;  %v1083_v22 = vld [vmem:[#allocation3 + $0x48] sm:$0xf0] }
  0x25   : > { %v271_v23 = vld [vmem:[%s269_s12] sm:$0xff]  ;;  %v1082_v24 = vor.u32 %v1380_v20, %v1081_v19  ;;  %v1233_v25 = vld [vmem:[#allocation6 + $0xf0] sm:$0xf]  ;;  %v1086_v27 = vor.u32 %v1379_v21, %v1083_v22  ;;  %v1225_v31 = vld [vmem:[#allocation6 + $0xe0] sm:$0xf]  ;;  %s1043_s26 = sshll.u32 %s263_s25, 3 }
  0x26   : > { %383 = vmatpush.bf16.msra.mxu0 %v1098_v11  ;;  %273 = vst.msk [vmem:[#allocation2] sm:$0xff] %vm272_vm0, %v271_v23  ;;  %v1418_v26 = vld [vmem:[#allocation6 + $0xf4] sm:$0xf0]  ;;  %v1073_v28 = vld [vmem:[#allocation3 + $0x30] sm:$0xf]  ;;  %s1368_s6 = sshll.u32 %s1749_s22, 3 }
  0x27   : > { %396 = vmatpush.bf16.msra.mxu1 %v1102_v12  ;;  %v1378_v29 = vld [vmem:[#allocation3 + $0x34] sm:$0xf0]  ;;  %v1234_v30 = vor.u32 %v1418_v26, %v1233_v25  ;;  %v1377_v32 = vld [vmem:[#allocation3 + $0x34] sm:$0xf]  ;;  %v1075_v33 = vld [vmem:[#allocation3 + $0x38] sm:$0xf0]  ;;  %s938_s8 = scalar_lea.hbm %s1870_s5, %s1368_s6 }
  0x28   : > { %v1416_v34 = vld [vmem:[#allocation6 + $0xe4] sm:$0xf0]  ;;  %v1169_v36 = vld [vmem:[#allocation6 + $0x70] sm:$0xf]  ;;  %v1402_v37 = vld [vmem:[#allocation6 + $0x74] sm:$0xf0]  ;;  %v1074_v38 = vor.u32 %v1378_v29, %v1073_v28  ;;  %v1078_v42 = vor.u32 %v1377_v32, %v1075_v33 }
  0x29   : > { %622 = vmatpush.bf16.msra.mxu3 %v1234_v30  ;;  %v1226_v35 = vor.u32 %v1416_v34, %v1225_v31  ;;  %v1170_v39 = vor.u32 %v1402_v37, %v1169_v36  ;;  %v1217_v40 = vld [vmem:[#allocation6 + $0xd0] sm:$0xf]  ;;  %v1414_v41 = vld [vmem:[#allocation6 + $0xd4] sm:$0xf0]  ;;  %v1065_v43 = vld [vmem:[#allocation3 + $0x20] sm:$0xf] }
  0x2a   : > { %384 = vmatpush.bf16.msra.mxu0 %v1090_v17  ;;  %v1376_v44 = vld [vmem:[#allocation3 + $0x24] sm:$0xf0]  ;;  %v1161_v45 = vld [vmem:[#allocation6 + $0x60] sm:$0xf]  ;;  %v1375_v46 = vld [vmem:[#allocation3 + $0x24] sm:$0xf]  ;;  %v1218_v49 = vor.u32 %v1414_v41, %v1217_v40 }
  0x2b   : > { %397 = vmatpush.bf16.msra.mxu1 %v1094_v18  ;;  %v1067_v47 = vld [vmem:[#allocation3 + $0x28] sm:$0xf0]  ;;  %609 = vmatpush.bf16.msra.mxu2 %v1170_v39  ;;  %v1400_v48 = vld [vmem:[#allocation6 + $0x64] sm:$0xf0]  ;;  %v1066_v51 = vor.u32 %v1376_v44, %v1065_v43  ;;  %v1209_v52 = vld [vmem:[#allocation6 + $0xc0] sm:$0xf] }
  0x2c   : > { %v1162_v50 = vor.u32 %v1400_v48, %v1161_v45  ;;  %v1412_v53 = vld [vmem:[#allocation6 + $0xc4] sm:$0xf0]  ;;  %v1153_v54 = vld [vmem:[#allocation6 + $0x50] sm:$0xf]  ;;  %v1070_v55 = vor.u32 %v1375_v46, %v1067_v47  ;;  %v1374_v57 = vld [vmem:[#allocation3 + $0x14] sm:$0xf0] }
  0x2d   : > { %623 = vmatpush.bf16.msra.mxu3 %v1226_v35  ;;  %v1057_v56 = vld [vmem:[#allocation3 + $0x10] sm:$0xf]  ;;  %v1398_v58 = vld [vmem:[#allocation6 + $0x54] sm:$0xf0]  ;;  %v1373_v59 = vld [vmem:[#allocation3 + $0x14] sm:$0xf]  ;;  %v1210_v62 = vor.u32 %v1412_v53, %v1209_v52 }
  0x2e   : > { %385 = vmatpush.bf16.msra.mxu0 %v1082_v24  ;;  %v1059_v60 = vld [vmem:[#allocation3 + $0x18] sm:$0xf0]  ;;  %v1154_v61 = vor.u32 %v1398_v58, %v1153_v54  ;;  %v1145_v63 = vld [vmem:[#allocation6 + $0x40] sm:$0xf]  ;;  %v1396_v0 = vld [vmem:[#allocation6 + $0x44] sm:$0xf0]  ;;  %v1058_v1 = vor.u32 %v1374_v57, %v1057_v56 }
  0x2f   : > { %398 = vmatpush.bf16.msra.mxu1 %v1086_v27  ;;  %610 = vmatpush.bf16.msra.mxu2 %v1162_v50  ;;  %v1049_v2 = vld [vmem:[#allocation3] sm:$0xf]  ;;  %v1201_v3 = vld [vmem:[#allocation6 + $0xb0] sm:$0xf]  ;;  %v1410_v4 = vld [vmem:[#allocation6 + $0xb4] sm:$0xf0]  ;;  %v1062_v5 = vor.u32 %v1373_v59, %v1059_v60  ;;  %v1146_v12 = vor.u32 %v1396_v0, %v1145_v63 }
  0x30   : > { %v1372_v6 = vld [vmem:[#allocation3 + $0x4] sm:$0xf0]  ;;  %v1371_v7 = vld [vmem:[#allocation3 + $0x4] sm:$0xf]  ;;  %v1051_v8 = vld [vmem:[#allocation3 + $0x8] sm:$0xf0]  ;;  %v1202_v14 = vor.u32 %v1410_v4, %v1201_v3 }
  0x31   : > { %624 = vmatpush.bf16.msra.mxu3 %v1218_v49  ;;  %v1417_v9 = vld [vmem:[#allocation6 + $0xf4] sm:$0xf]  ;;  %v1171_v11 = vld [vmem:[#allocation6 + $0x78] sm:$0xf0]  ;;  %v1137_v15 = vld [vmem:[#allocation6 + $0x30] sm:$0xf]  ;;  %v1050_v17 = vor.u32 %v1372_v6, %v1049_v2  ;;  %v1054_v21 = vor.u32 %v1371_v7, %v1051_v8 }
  0x32   : > { %386 = vmatpush.bf16.msra.mxu0 %v1074_v38  ;;  %v1401_v10 = vld [vmem:[#allocation6 + $0x74] sm:$0xf]  ;;  %v1235_v13 = vld [vmem:[#allocation6 + $0xf8] sm:$0xf0]  ;;  %v1394_v16 = vld [vmem:[#allocation6 + $0x34] sm:$0xf0] }
  0x33   : > { %399 = vmatpush.bf16.msra.mxu1 %v1078_v42  ;;  %611 = vmatpush.bf16.msra.mxu2 %v1154_v61  ;;  %v1819_v18 = vld [vmem:[#allocation2] sm:$0xff]  ;;  %v1193_v19 = vld [vmem:[#allocation6 + $0xa0] sm:$0xf]  ;;  %v1408_v20 = vld [vmem:[#allocation6 + $0xa4] sm:$0xf0]  ;;  %v1174_v22 = vor.u32 %v1401_v10, %v1171_v11  ;;  %v1238_v23 = vor.u32 %v1417_v9, %v1235_v13  ;;  %v1138_v26 = vor.u32 %v1394_v16, %v1137_v15  ;;  %s265_s30 = scalar_lea.vmem [#allocation9], %s1043_s26 }
  0x34   : > { %v1399_v24 = vld [vmem:[#allocation6 + $0x64] sm:$0xf]  ;;  %v1163_v25 = vld [vmem:[#allocation6 + $0x68] sm:$0xf0]  ;;  %v280_v27 = vpack.c.bf16 %v1819_v18, %v1819_v18  ;;  %v1194_v30 = vor.u32 %v1408_v20, %v1193_v19  ;;  %v1397_v33 = vld [vmem:[#allocation6 + $0x54] sm:$0xf] }
  0x35   : > { %625 = vmatpush.bf16.msra.mxu3 %v1210_v62  ;;  %v1415_v28 = vld [vmem:[#allocation6 + $0xe4] sm:$0xf]  ;;  %v1227_v29 = vld [vmem:[#allocation6 + $0xe8] sm:$0xf0]  ;;  %v1166_v31 = vor.u32 %v1399_v24, %v1163_v25  ;;  %v1155_v34 = vld [vmem:[#allocation6 + $0x58] sm:$0xf0] }
  0x36   : > { %387 = vmatpush.bf16.msra.mxu0 %v1066_v51  ;;  %v1230_v32 = vor.u32 %v1415_v28, %v1227_v29  ;;  %v1413_v35 = vld [vmem:[#allocation6 + $0xd4] sm:$0xf]  ;;  %v1219_v36 = vld [vmem:[#allocation6 + $0xd8] sm:$0xf0]  ;;  %v1158_v37 = vor.u32 %v1397_v33, %v1155_v34  ;;  %v1395_v39 = vld [vmem:[#allocation6 + $0x44] sm:$0xf] }
  0x37   : > { %400 = vmatpush.bf16.msra.mxu1 %v1070_v55  ;;  %612 = vmatpush.bf16.msra.mxu2 %v1146_v12  ;;  %v1222_v38 = vor.u32 %v1413_v35, %v1219_v36  ;;  %v1147_v40 = vld [vmem:[#allocation6 + $0x48] sm:$0xf0]  ;;  %v1411_v41 = vld [vmem:[#allocation6 + $0xc4] sm:$0xf]  ;;  %v1393_v45 = vld [vmem:[#allocation6 + $0x34] sm:$0xf] }
  0x38   : > { %v1211_v42 = vld [vmem:[#allocation6 + $0xc8] sm:$0xf0]  ;;  %v1150_v43 = vor.u32 %v1395_v39, %v1147_v40  ;;  %v1139_v46 = vld [vmem:[#allocation6 + $0x38] sm:$0xf0]  ;;  %v1409_v47 = vld [vmem:[#allocation6 + $0xb4] sm:$0xf] }
  0x39   : > { %626 = vmatpush.bf16.msra.mxu3 %v1202_v14  ;;  %v1214_v44 = vor.u32 %v1411_v41, %v1211_v42  ;;  %v1203_v48 = vld [vmem:[#allocation6 + $0xb8] sm:$0xf0]  ;;  %v1142_v49 = vor.u32 %v1393_v45, %v1139_v46  ;;  %v1407_v51 = vld [vmem:[#allocation6 + $0xa4] sm:$0xf]  ;;  %v1195_v52 = vld [vmem:[#allocation6 + $0xa8] sm:$0xf0] }
  0x3a   : > { %388 = vmatpush.bf16.msra.mxu0 %v1058_v1  ;;  %v1206_v50 = vor.u32 %v1409_v47, %v1203_v48  ;;  %v1198_v53 = vor.u32 %v1407_v51, %v1195_v52  ;;  %v1185_v54 = vld [vmem:[#allocation6 + $0x90] sm:$0xf]  ;;  %v1406_v55 = vld [vmem:[#allocation6 + $0x94] sm:$0xf0]  ;;  %v1405_v56 = vld [vmem:[#allocation6 + $0x94] sm:$0xf] }
  0x3b   : > { %401 = vmatpush.bf16.msra.mxu1 %v1062_v5  ;;  %613 = vmatpush.bf16.msra.mxu2 %v1138_v26  ;;  %v1186_v57 = vor.u32 %v1406_v55, %v1185_v54  ;;  %v1187_v58 = vld [vmem:[#allocation6 + $0x98] sm:$0xf0]  ;;  %v1129_v59 = vld [vmem:[#allocation6 + $0x20] sm:$0xf]  ;;  %v1392_v60 = vld [vmem:[#allocation6 + $0x24] sm:$0xf0] }
  0x3c   : > { %v1190_v61 = vor.u32 %v1405_v56, %v1187_v58  ;;  %v1130_v62 = vor.u32 %v1392_v60, %v1129_v59  ;;  %v1391_v63 = vld [vmem:[#allocation6 + $0x24] sm:$0xf]  ;;  %v1131_v0 = vld [vmem:[#allocation6 + $0x28] sm:$0xf0]  ;;  %v1177_v2 = vld [vmem:[#allocation6 + $0x80] sm:$0xf] }
  0x3d   : > { %627 = vmatpush.bf16.msra.mxu3 %v1194_v30  ;;  %v1134_v1 = vor.u32 %v1391_v63, %v1131_v0  ;;  %v1404_v3 = vld [vmem:[#allocation6 + $0x84] sm:$0xf0]  ;;  %v1403_v4 = vld [vmem:[#allocation6 + $0x84] sm:$0xf]  ;;  %v1179_v6 = vld [vmem:[#allocation6 + $0x88] sm:$0xf0] }
  0x3e   : > { %389 = vmatpush.bf16.msra.mxu0 %v1050_v17  ;;  %v1178_v5 = vor.u32 %v1404_v3, %v1177_v2  ;;  %v1121_v7 = vld [vmem:[#allocation6 + $0x10] sm:$0xf]  ;;  %v1390_v8 = vld [vmem:[#allocation6 + $0x14] sm:$0xf0]  ;;  %v1182_v9 = vor.u32 %v1403_v4, %v1179_v6  ;;  %v1389_v11 = vld [vmem:[#allocation6 + $0x14] sm:$0xf] }
  0x3f   : > { %402 = vmatpush.bf16.msra.mxu1 %v1054_v21  ;;  %614 = vmatpush.bf16.msra.mxu2 %v1130_v62  ;;  %v1122_v10 = vor.u32 %v1390_v8, %v1121_v7  ;;  %v1123_v12 = vld [vmem:[#allocation6 + $0x18] sm:$0xf0]  ;;  %v1113_v14 = vld [vmem:[#allocation6] sm:$0xf]  ;;  %v1388_v15 = vld [vmem:[#allocation6 + $0x4] sm:$0xf0] }
  0x40   : > { %v1126_v13 = vor.u32 %v1389_v11, %v1123_v12  ;;  %v1387_v16 = vld [vmem:[#allocation6 + $0x4] sm:$0xf]  ;;  %v1114_v17 = vor.u32 %v1388_v15, %v1113_v14  ;;  %v1115_v19 = vld [vmem:[#allocation6 + $0x8] sm:$0xf0]  ;;  %v1361_v21 = vld [vmem:[#allocation8 + $0xf0] sm:$0xf] }
  0x41   : > { %390 = vmatmul.bf16.vlgmr.msra.gmra.mxu0 %v280_v27  ;;  %628 = vmatpush.bf16.msra.mxu3 %v1186_v57  ;;  %v1118_v20 = vor.u32 %v1387_v16, %v1115_v19  ;;  %v1363_v25 = vld [vmem:[#allocation8 + $0xf8] sm:$0xf0]  ;;  %v1353_v26 = vld [vmem:[#allocation8 + $0xe0] sm:$0xf]  ;;  %v1447_v29 = vld [vmem:[#allocation8 + $0xe4] sm:$0xf] }
  0x42   : > { %635 = vmatpush.bf16.msrb.mxu0 %v1174_v22  ;;  %403 = vmatmul.bf16.vlgmr.msra.gmra.mxu1 %v280_v27  ;;  %v1450_v22 = vld [vmem:[#allocation8 + $0xf4] sm:$0xf0]  ;;  %v1448_v27 = vld [vmem:[#allocation8 + $0xe4] sm:$0xf0]  ;;  %v1355_v30 = vld [vmem:[#allocation8 + $0xe8] sm:$0xf0] }
  0x43   : > { %648 = vmatpush.bf16.msrb.mxu1 %v1238_v23  ;;  %615 = vmatpush.bf16.msra.mxu2 %v1122_v10  ;;  %v1449_v23 = vld [vmem:[#allocation8 + $0xf4] sm:$0xf]  ;;  %v1362_v24 = vor.u32 %v1450_v22, %v1361_v21  ;;  %v1446_v33 = vld [vmem:[#allocation8 + $0xd4] sm:$0xf0]  ;;  %v1358_v34 = vor.u32 %v1447_v29, %v1355_v30  ;;  %v1297_v35 = vld [vmem:[#allocation8 + $0x70] sm:$0xf] }
  0x44   : > { %v1366_v28 = vor.u32 %v1449_v23, %v1363_v25  ;;  %v1434_v36 = vld [vmem:[#allocation8 + $0x74] sm:$0xf0]  ;;  %v1347_v39 = vld [vmem:[#allocation8 + $0xd8] sm:$0xf0]  ;;  %v1432_v45 = vld [vmem:[#allocation8 + $0x64] sm:$0xf0] }
  0x45   : > { %629 = vmatpush.bf16.msra.mxu3 %v1178_v5  ;;  %v1298_v40 = vor.u32 %v1434_v36, %v1297_v35  ;;  %v1299_v41 = vld [vmem:[#allocation8 + $0x78] sm:$0xf0]  ;;  %v1431_v46 = vld [vmem:[#allocation8 + $0x64] sm:$0xf]  ;;  %v1291_v47 = vld [vmem:[#allocation8 + $0x68] sm:$0xf0] }
  0x46   : > { %636 = vmatpush.bf16.msrb.mxu0 %v1166_v31  ;;  %v1354_v31 = vor.u32 %v1448_v27, %v1353_v26  ;;  %v1294_v52 = vor.u32 %v1431_v46, %v1291_v47  ;;  %v1339_v54 = vld [vmem:[#allocation8 + $0xc8] sm:$0xf0]  ;;  %v1329_v57 = vld [vmem:[#allocation8 + $0xb0] sm:$0xf]  ;;  %v1442_v58 = vld [vmem:[#allocation8 + $0xb4] sm:$0xf0] }
  0x47   : > { %649 = vmatpush.bf16.msrb.mxu1 %v1230_v32  ;;  %616 = vmatpush.bf16.msra.mxu2 %v1114_v17  ;;  %v1345_v32 = vld [vmem:[#allocation8 + $0xd0] sm:$0xf]  ;;  %v1441_v59 = vld [vmem:[#allocation8 + $0xb4] sm:$0xf]  ;;  %v1331_v60 = vld [vmem:[#allocation8 + $0xb8] sm:$0xf0]  ;;  %v1330_v62 = vor.u32 %v1442_v58, %v1329_v57 }
  0x48   : > { %v1334_v63 = vor.u32 %v1441_v59, %v1331_v60  ;;  %v1281_v12 = vld [vmem:[#allocation8 + $0x50] sm:$0xf]  ;;  %v1429_v14 = vld [vmem:[#allocation8 + $0x54] sm:$0xf]  ;;  %v1283_v16 = vld [vmem:[#allocation8 + $0x58] sm:$0xf0] }
  0x49   : > { %875 = vmatpush.bf16.msrb.mxu3 %v1362_v24  ;;  %v1321_v17 = vld [vmem:[#allocation8 + $0xa0] sm:$0xf]  ;;  %v1440_v19 = vld [vmem:[#allocation8 + $0xa4] sm:$0xf0]  ;;  %v1439_v22 = vld [vmem:[#allocation8 + $0xa4] sm:$0xf] }
  0x4a   : > { %637 = vmatpush.bf16.msrb.mxu0 %v1158_v37  ;;  %v1433_v37 = vld [vmem:[#allocation8 + $0x74] sm:$0xf]  ;;  %v1322_v21 = vor.u32 %v1440_v19, %v1321_v17  ;;  %v1323_v23 = vld [vmem:[#allocation8 + $0xa8] sm:$0xf0]  ;;  %v1273_v25 = vld [vmem:[#allocation8 + $0x40] sm:$0xf] }
  0x4b   : > { %650 = vmatpush.bf16.msrb.mxu1 %v1222_v38  ;;  %v1445_v38 = vld [vmem:[#allocation8 + $0xd4] sm:$0xf]  ;;  %v1302_v42 = vor.u32 %v1433_v37, %v1299_v41  ;;  %862 = vmatpush.bf16.msrb.mxu2 %v1298_v40  ;;  %v1326_v24 = vor.u32 %v1439_v22, %v1323_v23  ;;  %v1428_v26 = vld [vmem:[#allocation8 + $0x44] sm:$0xf0]  ;;  %v1275_v29 = vld [vmem:[#allocation8 + $0x48] sm:$0xf0] }
  0x4c   : > { %v1350_v48 = vor.u32 %v1445_v38, %v1347_v39  ;;  %v1274_v27 = vor.u32 %v1428_v26, %v1273_v25  ;;  %v1313_v30 = vld [vmem:[#allocation8 + $0x90] sm:$0xf]  ;;  %v1426_v38 = vld [vmem:[#allocation8 + $0x34] sm:$0xf0]  ;;  %v1425_v39 = vld [vmem:[#allocation8 + $0x34] sm:$0xf] }
  0x4d   : > { %876 = vmatpush.bf16.msrb.mxu3 %v1354_v31  ;;  %v1265_v37 = vld [vmem:[#allocation8 + $0x30] sm:$0xf]  ;;  %v1267_v41 = vld [vmem:[#allocation8 + $0x38] sm:$0xf0]  ;;  %v1435_v46 = vld [vmem:[#allocation8 + $0x84] sm:$0xf] }
  0x4e   : > { %638 = vmatpush.bf16.msrb.mxu0 %v1150_v43  ;;  %v1289_v43 = vld [vmem:[#allocation8 + $0x60] sm:$0xf]  ;;  %v1266_v40 = vor.u32 %v1426_v38, %v1265_v37  ;;  %v1307_v47 = vld [vmem:[#allocation8 + $0x88] sm:$0xf0]  ;;  %v1421_v57 = vld [vmem:[#allocation8 + $0x14] sm:$0xf] }
  0x4f   : > { %651 = vmatpush.bf16.msrb.mxu1 %v1214_v44  ;;  %v1346_v44 = vor.u32 %v1446_v33, %v1345_v32  ;;  %v1290_v51 = vor.u32 %v1432_v45, %v1289_v43  ;;  %v1438_v32 = vld [vmem:[#allocation8 + $0x94] sm:$0xf0]  ;;  %v1437_v33 = vld [vmem:[#allocation8 + $0x94] sm:$0xf]  ;;  %v1436_v43 = vld [vmem:[#allocation8 + $0x84] sm:$0xf0] }
  0x50   : > { %v1314_v35 = vor.u32 %v1438_v32, %v1313_v30  ;;  %v1251_v59 = vld [vmem:[#allocation8 + $0x18] sm:$0xf0]  ;;  %s940_s10 = sshll.u32 %s265_s30, 4  ;;  %s942_s11 = sshll.u32 %s938_s8, 4  ;;  %s941_s10 = int_to_ptr.vmem [resolvable:$true] %s940_s10  ;;  %s943_s11 = int_to_ptr.hbm [resolvable:$true] %s942_s11 }
  0x51   : > { %877 = vmatpush.bf16.msrb.mxu3 %v1346_v44  ;;  %863 = vmatpush.bf16.msrb.mxu2 %v1290_v51  ;;  %v1270_v44 = vor.u32 %v1425_v39, %v1267_v41  ;;  %v1423_v51 = vld [vmem:[#allocation8 + $0x24] sm:$0xf]  ;;  %v1254_v60 = vor.u32 %v1421_v57, %v1251_v59  ;;  %s928_s12 = scalar_lea.sflag [#allocation5], %s263_s25  ;;  %s1634_s13 = sshra.s32 %s943_s11, 4  ;;  %s1635_s13 = int_to_ptr.hbm [resolvable:$true] %s1634_s13 }
  0x52   : > { %639 = vmatpush.bf16.msrb.mxu0 %v1142_v49  ;;  %v1337_v49 = vld [vmem:[#allocation8 + $0xc0] sm:$0xf]  ;;  %s1636_s22 = scalar_lea.hbm %s1635_s13, 8  ;;  %s1640_s16 = scalar_lea.hbm %s1870_s5, 16 }
  0x53   : > { %652 = vmatpush.bf16.msrb.mxu1 %v1206_v50  ;;  %v1444_v50 = vld [vmem:[#allocation8 + $0xc4] sm:$0xf0]  ;;  %p1637_p0 = scmp.ne.s32.totalorder %s1635_s13, %s1636_s22  ;;  %p1641_p3 = scmp.lt.s32.totalorder %s1635_s13, %s1870_s5 }
  0x54   : > { %v1338_v55 = vor.u32 %v1444_v50, %v1337_v49  ;;  %v1257_v49 = vld [vmem:[#allocation8 + $0x20] sm:$0xf]  ;;  %v1424_v50 = vld [vmem:[#allocation8 + $0x24] sm:$0xf0]  ;;  %p1642_p4 = scmp.lt.s32.totalorder %s1640_s16, %s1636_s22 }
  0x55   : > { %p1638_p1 = pnand %p1637_p0, %p1766_p5 }
  0x56   : > { %640 = vmatpush.bf16.msrb.mxu0 %v1134_v1  ;;  %878 = vmatpush.bf16.msrb.mxu3 %v1338_v55  ;;  %v1249_v55 = vld [vmem:[#allocation8 + $0x10] sm:$0xf]  ;;  %p1643_p7 = por %p1642_p4, %p1641_p3 }
  0x57   : > { %653 = vmatpush.bf16.msrb.mxu1 %v1198_v53  ;;  %v1443_v53 = vld [vmem:[#allocation8 + $0xc4] sm:$0xf]  ;;  %p1639_p2 = pneg %p1638_p1 }
  0x58   : > { %v1342_v56 = vor.u32 %v1443_v53, %v1339_v54  ;;  %v1259_v53 = vld [vmem:[#allocation8 + $0x28] sm:$0xf0] }
  0x59   : > { %v1262_v54 = vor.u32 %v1423_v51, %v1259_v53  ;;  %p1644_p8 = pnand %p1643_p7, %p1639_p2 }
  0x5a   : > { %641 = vmatpush.bf16.msrb.mxu0 %v1126_v13  ;;  %879 = vmatpush.bf16.msrb.mxu3 %v1330_v62  ;;  %v1430_v13 = vld [vmem:[#allocation8 + $0x54] sm:$0xf0]  ;;  %v1420_v62 = vld [vmem:[#allocation8 + $0x4] sm:$0xf0] }
  0x5b   : > { %654 = vmatpush.bf16.msrb.mxu1 %v1190_v61  ;;  %v275_v61 = vld [vmem:[%s1869_s4] ss:$4 sm:$0x3]  ;;  %v1282_v15 = vor.u32 %v1430_v13, %v1281_v12 }
  0x5c   : > { %v298_v0 = vperm.slane %v275_v61, 0  ;;  %v299_v1 = vperm.slane %v275_v61, 1  ;;  %v1241_v61 = vld [vmem:[#allocation8] sm:$0xf] }
  0x5d   : > { %864 = vmatpush.bf16.msrb.mxu2 %v1282_v15 }
  0x5e   : > { %642 = vmatpush.bf16.msrb.mxu0 %v1118_v20  ;;  %v1286_v20 = vor.u32 %v1429_v14, %v1283_v16  ;;  %880 = vmatpush.bf16.msrb.mxu3 %v1322_v21 }
  0x5f   : > { %655 = vmatpush.bf16.msrb.mxu1 %v1182_v9 }
  0x61   : > { %865 = vmatpush.bf16.msrb.mxu2 %v1274_v27 }
  0x62   : > { %888 = vmatpush.bf16.msra.mxu0 %v1302_v42  ;;  %881 = vmatpush.bf16.msrb.mxu3 %v1314_v35  ;;  %v1305_v42 = vld [vmem:[#allocation8 + $0x80] sm:$0xf] }
  0x63   : > { %901 = vmatpush.bf16.msra.mxu1 %v1366_v28  ;;  %v1427_v28 = vld [vmem:[#allocation8 + $0x44] sm:$0xf]  ;;  %v1306_v45 = vor.u32 %v1436_v43, %v1305_v42  ;;  %v922_v43 = vlaneseq }
  0x64   : > { %v1278_v31 = vor.u32 %v1427_v28, %v1275_v29 }
  0x65   : > { %866 = vmatpush.bf16.msrb.mxu2 %v1266_v40 }
  0x66   : > { %889 = vmatpush.bf16.msra.mxu0 %v1294_v52  ;;  %882 = vmatpush.bf16.msrb.mxu3 %v1306_v45  ;;  %v1258_v52 = vor.u32 %v1424_v50, %v1257_v49 }
  0x67   : > { %902 = vmatpush.bf16.msra.mxu1 %v1358_v34  ;;  %v1315_v34 = vld [vmem:[#allocation8 + $0x98] sm:$0xf0] }
  0x68   : > { %v1318_v36 = vor.u32 %v1437_v33, %v1315_v34 }
  0x69   : > { %867 = vmatpush.bf16.msrb.mxu2 %v1258_v52 }
  0x6a   : > { %890 = vmatpush.bf16.msra.mxu0 %v1286_v20 }
  0x6b   : > { %903 = vmatpush.bf16.msra.mxu1 %v1350_v48  ;;  %v1310_v48 = vor.u32 %v1435_v46, %v1307_v47 }
  0x6e   : > { %891 = vmatpush.bf16.msra.mxu0 %v1278_v31 }
  0x6f   : > { %904 = vmatpush.bf16.msra.mxu1 %v1342_v56  ;;  %v1422_v56 = vld [vmem:[#allocation8 + $0x14] sm:$0xf0] }
  0x70   : > { %v1250_v58 = vor.u32 %v1422_v56, %v1249_v55 }
  0x72   : > { %892 = vmatpush.bf16.msra.mxu0 %v1270_v44  ;;  %868 = vmatpush.bf16.msrb.mxu2 %v1250_v58  ;;  %v923_v44 = vand.u32 127, %v922_v43 }
  0x73   : > { %905 = vmatpush.bf16.msra.mxu1 %v1334_v63  ;;  %v1419_v63 = vld [vmem:[#allocation8 + $0x4] sm:$0xf] }
  0x74   : > { %vm924_vm1 = vcmp.eq.s32.totalorder %v923_v44, 8 }
  0x76   : > { %893 = vmatpush.bf16.msra.mxu0 %v1262_v54 }
  0x77   : > { %906 = vmatpush.bf16.msra.mxu1 %v1326_v24  ;;  %v1046_v24 = vld [vmem:[%s1869_s4 + $0x2] ss:$4 sm:$0x3] }
  0x78   : > { %v699_v27 = vperm.slane %v1046_v24, 1  ;;  %v698_v32 = vperm.slane %v1046_v24, 0 }
  0x7a   : > { %894 = vmatpush.bf16.msra.mxu0 %v1254_v60 }
  0x7b   : > { %907 = vmatpush.bf16.msra.mxu1 %v1318_v36 }
  0x7f   : > { %908 = vmatpush.bf16.msra.mxu1 %v1310_v48 }
  0xbe   : > { %v391_v2 = vpop.f32.mrf.mxu0 }
  0xbf   : > { %v392_v3 = vadd.f32 %v391_v2, %v298_v0  ;;  %v404_v4 = vpop.f32.mrf.mxu1  ;;  %v1242_v0 = vor.u32 %v1420_v62, %v1241_v61 }
  0xc0   : > { %v405_v5 = vadd.f32 %v404_v4, %v299_v1  ;;  %v1243_v1 = vld [vmem:[#allocation8 + $0x8] sm:$0xf0] }
  0xc1   : > { %1524 = vtanh.f32 %v392_v3  ;;  %v1246_v2 = vor.u32 %v1419_v63, %v1243_v1  ;;  %869 = vmatpush.bf16.msrb.mxu2 %v1242_v0  ;;  %v1045_v3 = vld [vmem:[%s1869_s4 + $0x1] ss:$4 sm:$0x3] }
  0xc2   : > { %v409_v6 = vmax.f32 %v405_v5, 0.0  ;;  %v446_v5 = vperm.slane %v1045_v3, 1 }
  0xc3   : > { %895 = vmatpush.bf16.msra.mxu0 %v1246_v2 }
  0xc4   : > { %v411_v7 = vpack.c.bf16 %v409_v6, %v409_v6 }
  0xc6   : > { %630 = vmatmul.bf16.vlgmr.msra.gmra.mxu3 %v411_v7  ;;  %656 = vmatmul.bf16.vlgmr.msrb.gmra.mxu1 %v411_v7  ;;  %v393_v8 = vpop.f32.mrf.mxu0 }
  0xc7   : > { %v1525_v9 = vpop.eup %1524  ;;  %v406_v10 = vpop.f32.mrf.mxu1 }
  0xc8   : > { %v410_v11 = vpack.c.bf16 %v1525_v9, %v1525_v9  ;;  %v445_v10 = vperm.slane %v1045_v3, 0 }
  0xca   : > { %617 = vmatmul.bf16.vlgmr.msra.gmra.mxu2 %v410_v11  ;;  %643 = vmatmul.bf16.vlgmr.msrb.gmra.mxu0 %v410_v11 }
 0x143   : > { %v657_v4 = vpop.f32.mrf.mxu1 }
 0x147   : > { %v644_v6 = vpop.f32.mrf.mxu0 }
 0x148   : > { %v645_v7 = vadd.f32 %v644_v6, %v446_v5 }
 0x149   : > { %v631_v8 = vpop.f32.mrf.mxu3 }
 0x14a   : > { %v658_v9 = vadd.f32 %v657_v4, %v645_v7 }
 0x14b   : > { %v659_v11 = vpop.f32.mrf.mxu1 }
 0x14c   : > { %v662_v12 = vmax.f32 %v658_v9, 0.0 }
 0x14d   : > { %v618_v13 = vpop.f32.mrf.mxu2 }
 0x14e   : > { %v664_v14 = vpack.c.bf16 %v662_v12, %v662_v12  ;;  %v619_v15 = vadd.f32 %v618_v13, %v445_v10 }
 0x14f   : > { %v646_v16 = vpop.f32.mrf.mxu0 }
 0x150   : > { %v632_v17 = vadd.f32 %v631_v8, %v619_v15  ;;  %883 = vmatmul.bf16.vlgmr.msrb.gmra.mxu3 %v664_v14  ;;  %909 = vmatmul.bf16.vlgmr.msra.gmra.mxu1 %v664_v14 }
 0x151   : > { %v633_v19 = vpop.f32.mrf.mxu3 }
 0x152   : > { %1526 = vtanh.f32 %v632_v17 }
 0x155   : > { %v620_v20 = vpop.f32.mrf.mxu2 }
 0x158   : > { %v1527_v21 = vpop.eup %1526 }
 0x159   : > { %v663_v22 = vpack.c.bf16 %v1527_v21, %v1527_v21 }
 0x15b   : > { %870 = vmatmul.bf16.vlgmr.msrb.gmra.mxu2 %v663_v22  ;;  %896 = vmatmul.bf16.vlgmr.msra.gmra.mxu0 %v663_v22 }
 0x1cd   : > { %v910_v23 = vpop.f32.mrf.mxu1 }
 0x1d3   : > { %v884_v25 = vpop.f32.mrf.mxu3 }
 0x1d5   : > { %v912_v26 = vpop.f32.mrf.mxu1 }
 0x1d8   : > { %v897_v28 = vpop.f32.mrf.mxu0 }
 0x1d9   : > { %v898_v29 = vadd.f32 %v897_v28, %v699_v27 }
 0x1db   : > { %v886_v30 = vpop.f32.mrf.mxu3  ;;  %v911_v31 = vadd.f32 %v910_v23, %v898_v29 }
 0x1dd   : > { %v915_v33 = vsub.f32 0.0, %v911_v31  ;;  %919 = vadd.xlane.f32.xlu0 %v911_v31 }
 0x1de   : > { %v871_v34 = vpop.f32.mrf.mxu2 }
 0x1df   : > { %v916_v35 = vmul.f32 1.442695, %v915_v33  ;;  %v872_v36 = vadd.f32 %v871_v34, %v698_v32 }
 0x1e0   : > { %v899_v37 = vpop.f32.mrf.mxu0 }
 0x1e1   : > { %1528 = vpow2.f32 %v916_v35  ;;  %v885_v38 = vadd.f32 %v884_v25, %v872_v36 }
 0x1e3   : > { %v914_v39 = vsub.f32 %v1819_v18, %v885_v38 }
 0x1e6   : > { %v873_v40 = vpop.f32.mrf.mxu2 }
 0x1e7   : > { %v1529_v41 = vpop.eup %1528 }
 0x1e8   : > { %v918_v42 = vmul.f32 %v1529_v41, %v914_v39 }
 0x250   : > { %v920_v45 = vpop.xlane.xlu0 %919 }
 0x251   : > { %v921_v46 = vsub.f32 0.0, %v920_v45 }
 0x253   : > { %v925_v18 = vsel %vm924_vm1, %v921_v46, %v918_v42 }
 0x254   : > { %926 = vst [vmem:[%s265_s30] sm:$0xff] %v925_v18 }
 0x255   : > { %1647 = shalt.err (!%p1644_p8)
}
 0x256   : > { %1463 = dma.vmem_to_hbm [thread:$0]  (%p1766_p5), %s941_s10, 128, %s943_s11, %s928_s12  }
 0x257 PF: > { %p1485_p9 = scmp.ge.s32.totalorder %s1690_s21, 2  ;;  %s954_s25 = sand.u32 1, %s1678_s18  }
 0x258   : > { %s955_s26 = scalar_lea.sflag [#allocation5], %s954_s25 }
 0x259   : > { %p1476_p10 = pnand %p1485_p9, %p1770_p6 }
 0x25b   : > { %p1477_p11 = pneg %p1476_p10 }
 0x25d   : > { %1673 = dma.done.wait (%p1477_p11), %s955_s26, 128  }
 0x25e   : > { %1675 = vsyncadd (%p1477_p11), %s955_s26, 4294967168  ;;  %p17_p12 = scmp.ge.s32.totalorder %s1753_s24, 4   ;;  %s1875_s18 = smov %s1682_s19 }
 0x25f   : > { %s1876_s19 = smov %s1686_s20  ;;  %s1877_s20 = smov %s1764_s27 }
 0x260   : > { %s1878_s21 = smov %s1753_s24  ;;  %19 = sbr.rel (!%p17_p12) target bundleno = 5 (0x5), region = 90 }
 0x265   :  { %961 = vsyncpa [#allocation4], 1 }
 0x266   :  { %963 = vsyncpa [#allocation4 + $0x1], 1 }
 0x267   :  { %964 = vsyncpa [#allocation7], 1 }
 0x268   :  { %965 = vsyncpa [#allocation5], 1 }
 0x269   :  { %967 = vsyncpa [#allocation5 + $0x1], 1 }

</bundles_post_ra>
